<compile_context>
chip_gen: v5e
topology: v5e:2x2
jax: 0.10.0
libtpu: 0.0.40
codegen_flags: <defaults>
</compile_context>

<pallas_src>
import functools

import jax
import jax.numpy as jnp
from jax.experimental import pallas as pl
from jax.experimental.pallas import tpu as pltpu


def _reproducer_kernel(x_ref, wb_ref, o_ref, *, batch, k_in):
    # x_ref:  SMEM (B, K) f32      -- per-row linear coefficients (scalar path)
    # wb_ref: VMEM (K+1, TN) f32   -- weight rows 0..K-1, bias in row K
    # o_ref:  VMEM (B, TN) f32     -- output tile
    bias = wb_ref[k_in:k_in + 1, :]                    # (1, TN)
    rows = []
    for r in range(batch):                             # B tiny & static -> unrolled
        acc = bias
        for c in range(k_in):                          # K=2 -> 2 broadcast-FMAs
            acc = acc + x_ref[r, c] * wb_ref[c:c + 1, :]
        rows.append(acc)
    out = jnp.concatenate(rows, axis=0) if batch > 1 else rows[0]
    # single (B, TN) store: unmasked, lane-dense
    o_ref[...] = jnp.maximum(out, 0.0).astype(o_ref.dtype)


def _pick_f_tile(f_pad, n_rows, max_tile_bytes=4 << 20):
    """Largest lane-dense tile (multiple of 128) dividing f_pad within budget.

    f_pad is already a multiple of 128.  If the whole F axis fits the budget,
    return f_pad so the kernel runs as a single grid step.
    """
    bytes_per_col = n_rows * 4  # f32 weight+bias rows + output rows per column
    cap = max(128, ((max_tile_bytes // bytes_per_col) // 128) * 128)
    if f_pad <= cap:
        return f_pad
    tn = cap
    while tn >= 128 and f_pad % tn != 0:
        tn -= 128
    return max(tn, 128)  # 128 always divides f_pad


def reproducer_forward(x, weight, bias, reshape_size, metadata):
    """Equivalent of ReproducerNetwork.forward.

    x:       (B, 2) float32
    weight:  (2, F) float32  (transposed relative to torch's (F, 2))
    bias:    (F,)   float32
    reshape_size: (C, H, W) with C*H*W == F
    """
    B, K = x.shape
    F_out = weight.shape[1]
    assert K == 2 and weight.shape[0] == K and bias.shape == (F_out,)

    # Fold bias into the weight operand: (K+1, F) single streamed input.
    wb = jnp.concatenate([weight, bias.reshape(1, F_out)], axis=0)

    # Pad F to a lane-dense multiple of 128 (no-op when already aligned).
    F_pad = ((F_out + 127) // 128) * 128
    if F_pad != F_out:
        wb = jnp.pad(wb, ((0, 0), (0, F_pad - F_out)))

    tn = _pick_f_tile(F_pad, n_rows=K + 1 + B)
    grid = (F_pad // tn,)

    kernel = functools.partial(_reproducer_kernel, batch=B, k_in=K)

    out_flat = pl.pallas_call(
        kernel,
        out_shape=jax.ShapeDtypeStruct((B, F_pad), jnp.float32),
        grid=grid,
        in_specs=[
            # whole (B, K) coefficient matrix resident in SMEM (no tiling)
            pl.BlockSpec(memory_space=pltpu.MemorySpace.SMEM),
            # lane-dense merged weight+bias tiles streamed over the F axis
            pl.BlockSpec((K + 1, tn), lambda j: (0, j)),
        ],
        out_specs=pl.BlockSpec((B, tn), lambda j: (0, j)),
        compiler_params=pltpu.CompilerParams(
            # F tiles are independent; with grid=(1,) this is a no-op, and for
            # larger F it lets v7x's two TensorCores split the output columns.
            dimension_semantics=("parallel",),
        ),
    )(x, wb)

    if F_pad != F_out:
        out_flat = out_flat[:, :F_out]

    C, H, W = reshape_size
    return_x = out_flat.reshape(-1, C, H, W)   # metadata-only change, NCHW order
    return ((return_x, list(metadata)), (None, None), (None, None))


def init_params(key, output_channels, height, width):
    """Deterministic init matching nn.Linear(2, H*W*C) shapes.

    torch default: U(-1/sqrt(fan_in), 1/sqrt(fan_in)) with fan_in = 2.
    """
    F_out = height * width * output_channels
    fan_in = 2
    bound = 1.0 / jnp.sqrt(jnp.asarray(fan_in, jnp.float32))
    k_w, k_b = jax.random.split(key)
    # store weight already transposed as (in, out) = (2, F_out)
    weight = jax.random.uniform(k_w, (fan_in, F_out), jnp.float32, -bound, bound)
    bias = jax.random.uniform(k_b, (F_out,), jnp.float32, -bound, bound)
    return weight, bias


if __name__ == "__main__":
    output_channels, height, width = 4, 16, 16
    batch = 2

    key = jax.random.PRNGKey(0)
    k_params, k_x = jax.random.split(key)

    weight, bias = init_params(k_params, output_channels, height, width)
    x = jax.random.normal(k_x, (batch, 2), jnp.float32)
    metadata = ("sample_0", "sample_1")

    ((out, md), (_, _), (_, _)) = reproducer_forward(
        x, weight, bias, (output_channels, height, width), metadata
    )
    out = jax.block_until_ready(out)

    # sanity checks against pure-JAX reference
    ref = jnp.maximum(x @ weight + bias, 0.0).reshape(
        -1, output_channels, height, width
    )
    assert out.shape == (batch, output_channels, height, width)
    assert jnp.allclose(out, ref, atol=1e-5, rtol=1e-5)
    assert md == list(metadata)

    print("KERNEL_OK")
</pallas_src>

<mosaic_0001>
module attributes {stable_mosaic.version = 11 : i64} {
  func.func @_reproducer_kernel(%arg0: i32, %arg1: memref<2x2xf32, #tpu.memory_space<smem>>, %arg2: memref<3x1024xf32, #tpu.memory_space<vmem>>, %arg3: memref<2x1024xf32, #tpu.memory_space<vmem>>) attributes {dimension_semantics = [#tpu.dimension_semantics<parallel>], iteration_bounds = array<i64: 1>, scalar_prefetch = 0 : i64, scratch_operands = 0 : i64, tpu.core_type = #tpu.core_type<tc>, window_params = [{transform_indices = @transform_0, window_bounds = array<i64: 2, 2>}, {transform_indices = @transform_1, window_bounds = array<i64: 3, 1024>}, {transform_indices = @transform_2, window_bounds = array<i64: 2, 1024>}]} {
    %c2 = arith.constant 2 : index
    %c0 = arith.constant 0 : index
    %0 = vector.load %arg2[%c2, %c0] : memref<3x1024xf32, #tpu.memory_space<vmem>>, vector<1x1024xf32>
    %c0_0 = arith.constant 0 : index
    %c0_1 = arith.constant 0 : index
    %1 = memref.load %arg1[%c0_0, %c0_1] : memref<2x2xf32, #tpu.memory_space<smem>>
    %c0_2 = arith.constant 0 : index
    %c0_3 = arith.constant 0 : index
    %2 = vector.load %arg2[%c0_2, %c0_3] : memref<3x1024xf32, #tpu.memory_space<vmem>>, vector<1x1024xf32>
    %3 = vector.broadcast %1 : f32 to vector<1x1024xf32>
    %4 = arith.mulf %3, %2 : vector<1x1024xf32>
    %5 = arith.addf %0, %4 : vector<1x1024xf32>
    %c0_4 = arith.constant 0 : index
    %c1 = arith.constant 1 : index
    %6 = memref.load %arg1[%c0_4, %c1] : memref<2x2xf32, #tpu.memory_space<smem>>
    %c1_5 = arith.constant 1 : index
    %c0_6 = arith.constant 0 : index
    %7 = vector.load %arg2[%c1_5, %c0_6] : memref<3x1024xf32, #tpu.memory_space<vmem>>, vector<1x1024xf32>
    %8 = vector.broadcast %6 : f32 to vector<1x1024xf32>
    %9 = arith.mulf %8, %7 : vector<1x1024xf32>
    %10 = arith.addf %5, %9 : vector<1x1024xf32>
    %c1_7 = arith.constant 1 : index
    %c0_8 = arith.constant 0 : index
    %11 = memref.load %arg1[%c1_7, %c0_8] : memref<2x2xf32, #tpu.memory_space<smem>>
    %c0_9 = arith.constant 0 : index
    %c0_10 = arith.constant 0 : index
    %12 = vector.load %arg2[%c0_9, %c0_10] : memref<3x1024xf32, #tpu.memory_space<vmem>>, vector<1x1024xf32>
    %13 = vector.broadcast %11 : f32 to vector<1x1024xf32>
    %14 = arith.mulf %13, %12 : vector<1x1024xf32>
    %15 = arith.addf %0, %14 : vector<1x1024xf32>
    %c1_11 = arith.constant 1 : index
    %c1_12 = arith.constant 1 : index
    %16 = memref.load %arg1[%c1_11, %c1_12] : memref<2x2xf32, #tpu.memory_space<smem>>
    %c1_13 = arith.constant 1 : index
    %c0_14 = arith.constant 0 : index
    %17 = vector.load %arg2[%c1_13, %c0_14] : memref<3x1024xf32, #tpu.memory_space<vmem>>, vector<1x1024xf32>
    %18 = vector.broadcast %16 : f32 to vector<1x1024xf32>
    %19 = arith.mulf %18, %17 : vector<1x1024xf32>
    %20 = arith.addf %15, %19 : vector<1x1024xf32>
    %21 = tpu.concatenate %10, %20 in 0 : vector<1x1024xf32>, vector<1x1024xf32> -> vector<2x1024xf32>
    %cst = arith.constant 0.000000e+00 : f32
    %22 = vector.broadcast %cst : f32 to vector<2x1024xf32>
    %23 = arith.maximumf %21, %22 : vector<2x1024xf32>
    %c0_15 = arith.constant 0 : index
    %c0_16 = arith.constant 0 : index
    %24 = vector.load %arg3[%c0_15, %c0_16] : memref<2x1024xf32, #tpu.memory_space<vmem>>, vector<2x1024xf32>
    tpu.vector_store %arg3[%c0_15, %c0_16], %23 {strides = array<i32>} : memref<2x1024xf32, #tpu.memory_space<vmem>>, vector<2x1024xf32>,
    return
  }
  func.func @transform_0(%arg0: i32) -> (i32, i32) {
    %c0_i32 = arith.constant 0 : i32
    %c0_i32_0 = arith.constant 0 : i32
    %c0_i32_1 = arith.constant 0 : i32
    return %c0_i32, %c0_i32_0 : i32, i32
  }
  func.func @transform_1(%arg0: i32) -> (i32, i32) {
    %c0_i32 = arith.constant 0 : i32
    %c0_i32_0 = arith.constant 0 : i32
    return %c0_i32, %arg0 : i32, i32
  }
  func.func @transform_2(%arg0: i32) -> (i32, i32) {
    %c0_i32 = arith.constant 0 : i32
    %c0_i32_0 = arith.constant 0 : i32
    return %c0_i32, %arg0 : i32, i32
  }
}

</mosaic_0001>

<bundles_post_ra>
// kernel: tpu_custom_call.1
= control target key start
LH: loop header
LB: loop body
LE: loop exit
PB: predicated region body
PF: predicated region fallthrough
CT: control target
= control target key end

     0   :  { %7 = vsyncpa [#allocation5], 0  ;;  %s269_s0 = inlined_call_operand.hbm [shape: f32[2,2], index: 0, kind: input, shape index: {}]   ;;  %s270_s1 = inlined_call_operand.hbm [shape: f32[3,1024], index: 1, kind: input, shape index: {}]   ;;  %s271_s2 = inlined_call_operand.hbm [shape: f32[2,1024], index: 2, kind: output, shape index: {}]  }
   0x1   :  { %8 = vsyncpa [#allocation3], 0 }
   0x2   :  { %9 = vsyncpa [#allocation4], 0  ;;  %s15_s11 = sshll.u32 %s269_s0, 4  ;;  %s24_s14 = sshll.u32 %s270_s1, 4  ;;  %s16_s11 = int_to_ptr.hbm [resolvable:$true] %s15_s11  ;;  %s25_s14 = int_to_ptr.hbm [resolvable:$true] %s24_s14 }
   0x3   :  { %s228_s15 = smov [#allocation2]   ;;  %s229_s16 = smov [#allocation6]  }
   0x4   :  { %18 = dma.hbm_to_smem %s16_s11, 32, %s228_s15, [#allocation5]  }
   0x5   :  { %s26_s17 = sshll.u32 %s229_s16, 4  ;;  %s27_s17 = int_to_ptr.vmem [resolvable:$true] %s26_s17 }
   0x6   :  { %29 = dma.hbm_to_vmem [thread:$0]  %s25_s14, 512, %s27_s17, [#allocation3]  }
   0x7   :  { %222 = dma.done.wait [#allocation5], 32  }
   0x8   :  { %223 = vsyncadd [#allocation5], 4294967264 }
   0x9   :  { %224 = dma.done.wait [#allocation3], 512  }
   0xa   :  { %225 = vsyncadd [#allocation3], 4294966784 }
   0xb   :  { %38 = sfence }
   0xc   :  { %s41_s18 = sld [smem:[#allocation2]]  ;;  %v42_v0 = vld [vmem:[#allocation6] ss:$4 sm:$0xff]  ;;  %v48_v1 = vld [vmem:[#allocation6 + $0x1] ss:$4 sm:$0xff]  ;;  %vm94_vm0 = vcmask 1040384  }
   0xd   :  { %s156_s19 = sld [smem:[#allocation2 + $0x1]]  ;;  %v40_v2 = vld [vmem:[#allocation6 + $0x2] ss:$4 sm:$0xff]  ;;  %vm125_vm1 = vcmask 1041408   ;;  %vm127_vm2 = vcmask 1045508   ;;  %vm129_vm3 = vcmask 1043456  }
   0xe   :  { %s157_s0 = sld [smem:[#allocation2 + $0x80]]  ;;  %s230_s1 = smov [#allocation7]  }
   0xf   :  { %s158_s20 = sld [smem:[#allocation2 + $0x81]]  ;;  %s143_s21 = sshll.u32 %s230_s1, 4  ;;  %s144_s21 = int_to_ptr.vmem [resolvable:$true] %s143_s21 }
  0x10   :  { %s145_s24 = sshll.u32 %s271_s2, 4  ;;  %s146_s24 = int_to_ptr.hbm [resolvable:$true] %s145_s24 }
  0x12   :  { %v43_v3 = vstv %s41_s18 }
  0x13   :  { %v44_v4 = vmul.f32 %v43_v3, %v42_v0  ;;  %v49_v5 = vstv %s156_s19 }
  0x14   :  { %v50_v6 = vmul.f32 %v49_v5, %v48_v1  ;;  %v53_v7 = vstv %s157_s0 }
  0x15   :  { %v45_v8 = vadd.f32 %v44_v4, %v40_v2  ;;  %v54_v9 = vmul.f32 %v53_v7, %v42_v0  ;;  %v57_v10 = vstv %s158_s20 }
  0x16   :  { %v58_v11 = vmul.f32 %v57_v10, %v48_v1 }
  0x17   :  { %v51_v12 = vadd.f32 %v50_v6, %v45_v8  ;;  %v55_v13 = vadd.f32 %v54_v9, %v40_v2 }
  0x19   :  { %v59_v14 = vadd.f32 %v58_v11, %v55_v13  ;;  %v61_v15 = vperm.slane %v51_v12, 0  ;;  %v62_v16 = vperm.slane %v51_v12, 1  ;;  %v63_v17 = vperm.slane %v51_v12, 2 }
  0x1a   :  { %v64_v18 = vperm.slane %v51_v12, 3  ;;  %v65_v19 = vperm.slane %v51_v12, 4  ;;  %v66_v20 = vperm.slane %v51_v12, 5  ;;  %v67_v21 = vperm.slane %v51_v12, 6 }
  0x1b   :  { %v78_v22 = vperm.slane %v59_v14, 0  ;;  %v79_v23 = vperm.slane %v59_v14, 1  ;;  %v80_v24 = vperm.slane %v59_v14, 2  ;;  %v81_v25 = vperm.slane %v59_v14, 3 }
  0x1c   :  { %v68_v26 = vperm.slane %v51_v12, 7  ;;  %v82_v27 = vperm.slane %v59_v14, 4  ;;  %v83_v28 = vperm.slane %v59_v14, 5  ;;  %v84_v29 = vperm.slane %v59_v14, 6 }
  0x1d   :  { %v95_v30 = vsel %vm94_vm0, %v61_v15, %v78_v22  ;;  %v96_v31 = vsel %vm94_vm0, %v62_v16, %v79_v23  ;;  %v97_v32 = vsel %vm94_vm0, %v63_v17, %v80_v24  ;;  %v98_v33 = vsel %vm94_vm0, %v64_v18, %v81_v25 }
  0x1e   :  { %v103_v34 = vmax.f32 %v95_v30, 0.0  ;;  %v104_v35 = vmax.f32 %v96_v31, 0.0  ;;  %v105_v36 = vmax.f32 %v97_v32, 0.0  ;;  %v106_v37 = vmax.f32 %v98_v33, 0.0 }
  0x1f   :  { %v85_v38 = vperm.slane %v59_v14, 7  ;;  %v99_v39 = vsel %vm94_vm0, %v65_v19, %v82_v27  ;;  %v100_v40 = vsel %vm94_vm0, %v66_v20, %v83_v28  ;;  %v101_v41 = vsel %vm94_vm0, %v67_v21, %v84_v29 }
  0x20   :  { %v119_v42 = vrot.slane %v104_v35, 6  ;;  %v120_v43 = vrot.slane %v105_v36, 4  ;;  %v121_v44 = vrot.slane %v106_v37, 2  ;;  %v107_v46 = vmax.f32 %v99_v39, 0.0 }
  0x21   :  { %v102_v45 = vsel %vm94_vm0, %v68_v26, %v85_v38  ;;  %v108_v47 = vmax.f32 %v100_v40, 0.0  ;;  %v109_v48 = vmax.f32 %v101_v41, 0.0 }
  0x22   :  { %v126_v49 = vsel %vm125_vm1, %v103_v34, %v119_v42  ;;  %v128_v50 = vsel %vm127_vm2, %v120_v43, %v121_v44  ;;  %v110_v51 = vmax.f32 %v102_v45, 0.0 }
  0x23   :  { %v130_v52 = vsel %vm129_vm3, %v126_v49, %v128_v50  ;;  %v122_v53 = vrot.slane %v108_v47, 6  ;;  %v123_v54 = vrot.slane %v109_v48, 4 }
  0x24   :  { %136 = vst [vmem:[#allocation7] sm:$0xff] %v130_v52  ;;  %v124_v55 = vrot.slane %v110_v51, 2 }
  0x25   :  { %v131_v56 = vsel %vm125_vm1, %v107_v46, %v122_v53 }
  0x26   :  { %v132_v57 = vsel %vm127_vm2, %v123_v54, %v124_v55 }
  0x27   :  { %v133_v58 = vsel %vm129_vm3, %v131_v56, %v132_v57 }
  0x28   :  { %137 = vst [vmem:[#allocation7 + $0x8] sm:$0xff] %v133_v58 }
  0x29   :  { %148 = dma.vmem_to_hbm [thread:$0]  %s144_s21, 256, %s146_s24, [#allocation4]  }
  0x2a   :  { %226 = dma.done.wait [#allocation4], 256  }
  0x2b   :  { %227 = vsyncadd [#allocation4], 4294967040 }
  0x2c   :  { %153 = vsyncpa [#allocation3], 1 }
  0x2d   :  { %154 = vsyncpa [#allocation4], 1 }
  0x2e   :  { %155 = vsyncpa [#allocation5], 1 }

</bundles_post_ra>
